<compile_context>
chip_gen: v7x
topology: tpu7x:2x2x1
jax: 0.10.0
libtpu: 0.0.40
codegen_flags: <defaults>
</compile_context>

<pallas_src>
import jax
import jax.numpy as jnp
from jax.experimental import pallas as pl
from jax.experimental.pallas import tpu as pltpu


def _round_up(x, m):
    return ((x + m - 1) // m) * m


def _make_linear_kernel(n_blocks):
    """Kernel over refs: (x_1..x_n, w_1..w_n, bias, out).

    x_i: (TB, f_i)   activation batch tile for hero block i
    w_i: (f_i, L_pad) pre-transposed weight slice (resident across grid)
    bias: (1, L_pad)  resident across grid
    out: (TB, L_pad)  lane-dense output slab
    """

    def kernel(*refs):
        x_refs = refs[:n_blocks]
        w_refs = refs[n_blocks:2 * n_blocks]
        b_ref = refs[2 * n_blocks]
        o_ref = refs[2 * n_blocks + 1]

        # Fused concat: sum of per-block matmuls == concat(x) @ concat_F(w).
        acc = jnp.dot(x_refs[0][...], w_refs[0][...],
                      preferred_element_type=jnp.float32)
        for xr, wr in zip(x_refs[1:], w_refs[1:]):
            acc = acc + jnp.dot(xr[...], wr[...],
                                preferred_element_type=jnp.float32)

        o_ref[...] = (acc + b_ref[...]).astype(o_ref.dtype)

    return kernel


def linear_regression_forward(hero_features, weight, bias, *, batch_tile=None):
    """hero_features: list/tuple of [B, f_i]; weight: [L, F]; bias: [L]."""
    n = len(hero_features)
    B = hero_features[0].shape[0]
    splits = [int(h.shape[1]) for h in hero_features]
    F = sum(splits)
    L = int(weight.shape[0])
    assert weight.shape[1] == F, "weight in_features must match concat width"
    dtype = hero_features[0].dtype

    # Lane-dense output: pad the label dim up to a multiple of 128.
    L_pad = _round_up(L, 128)

    # Batch tiling (sublane-aligned). For small B this is a single tile.
    if batch_tile is None:
        batch_tile = min(128, _round_up(B, 8))
    TB = batch_tile
    B_pad = _round_up(B, TB)

    # Layout plumbing in the wrapper (free relative to the kernel):
    # pre-transpose weight to [F, L_pad] and split along F per hero block.
    w_t = jnp.zeros((F, L_pad), dtype).at[:, :L].set(weight.T.astype(dtype))
    w_blocks = []
    off = 0
    for f_i in splits:
        w_blocks.append(w_t[off:off + f_i, :])
        off += f_i

    # Bias as a (1, L_pad) f32 tile, resident across the whole grid.
    b_pad = jnp.zeros((1, L_pad), jnp.float32).at[0, :L].set(
        bias.astype(jnp.float32))

    # Pad activations along batch to a multiple of TB (padded rows are sliced
    # off afterwards).
    x_blocks = []
    for h in hero_features:
        if B_pad != B:
            h = jnp.pad(h, ((0, B_pad - B), (0, 0)))
        x_blocks.append(h)

    grid = (B_pad // TB,)

    in_specs = (
        # activations: tiled over batch
        [pl.BlockSpec((TB, f_i), lambda i: (i, 0)) for f_i in splits]
        # weights: same block every step -> stay resident in VMEM
        + [pl.BlockSpec((f_i, L_pad), lambda i: (0, 0)) for f_i in splits]
        # bias: resident
        + [pl.BlockSpec((1, L_pad), lambda i: (0, 0))]
    )
    out_spec = pl.BlockSpec((TB, L_pad), lambda i: (i, 0))

    out_padded = pl.pallas_call(
        _make_linear_kernel(n),
        out_shape=jax.ShapeDtypeStruct((B_pad, L_pad), dtype),
        grid=grid,
        in_specs=in_specs,
        out_specs=out_spec,
        compiler_params=pltpu.CompilerParams(
            dimension_semantics=("parallel",)),
    )(*x_blocks, *w_blocks, b_pad)

    # Slice back to the logical [B, L] result.
    return out_padded[:B, :L]


if __name__ == "__main__":
    # Module config: two hero-feature blocks of 16 features each -> F = 32,
    # num_labels = 8, batch = 8.
    B = 8
    feat_splits = (16, 16)
    num_features = sum(feat_splits)   # 32
    num_labels = 8

    key = jax.random.PRNGKey(0)
    k_h1, k_h2, k_w, k_b = jax.random.split(key, 4)

    bound = 1.0 / jnp.sqrt(jnp.float32(num_features))
    weight = jax.random.uniform(k_w, (num_labels, num_features),
                                jnp.float32, minval=-bound, maxval=bound)
    bias = jax.random.uniform(k_b, (num_labels,),
                              jnp.float32, minval=-bound, maxval=bound)

    hero_features = [
        jax.random.normal(k_h1, (B, feat_splits[0]), jnp.float32),
        jax.random.normal(k_h2, (B, feat_splits[1]), jnp.float32),
    ]

    out = linear_regression_forward(hero_features, weight, bias)
    out = jax.block_until_ready(out)

    # Reference check (plain JAX, matches torch nn.Linear semantics).
    x_ref = jnp.concatenate(hero_features, axis=1)
    ref = x_ref @ weight.T + bias
    assert out.shape == (B, num_labels)
    assert jnp.allclose(out, ref, atol=1e-5, rtol=1e-5)

    print("KERNEL_OK")
</pallas_src>

<mosaic_0001>
module attributes {stable_mosaic.version = 11 : i64} {
  func.func @kernel(%arg0: i32, %arg1: memref<8x16xf32, #tpu.memory_space<vmem>>, %arg2: memref<8x16xf32, #tpu.memory_space<vmem>>, %arg3: memref<16x128xf32, #tpu.memory_space<vmem>>, %arg4: memref<16x128xf32, #tpu.memory_space<vmem>>, %arg5: memref<1x128xf32, #tpu.memory_space<vmem>>, %arg6: memref<8x128xf32, #tpu.memory_space<vmem>>) attributes {dimension_semantics = [#tpu.dimension_semantics<parallel>], iteration_bounds = array<i64: 1>, scalar_prefetch = 0 : i64, scratch_operands = 0 : i64, tpu.core_type = #tpu.core_type<tc>, window_params = [{transform_indices = @transform_0, window_bounds = array<i64: 8, 16>}, {transform_indices = @transform_1, window_bounds = array<i64: 8, 16>}, {pipeline_mode = #tpu.pipeline_mode<synchronous>, transform_indices = @transform_2, window_bounds = array<i64: 16, 128>}, {pipeline_mode = #tpu.pipeline_mode<synchronous>, transform_indices = @transform_3, window_bounds = array<i64: 16, 128>}, {pipeline_mode = #tpu.pipeline_mode<synchronous>, transform_indices = @transform_4, window_bounds = array<i64: 1, 128>}, {transform_indices = @transform_5, window_bounds = array<i64: 8, 128>}]} {
    %c0 = arith.constant 0 : index
    %c0_0 = arith.constant 0 : index
    %0 = vector.load %arg1[%c0, %c0_0] : memref<8x16xf32, #tpu.memory_space<vmem>>, vector<8x16xf32>
    %c0_1 = arith.constant 0 : index
    %c0_2 = arith.constant 0 : index
    %1 = vector.load %arg3[%c0_1, %c0_2] : memref<16x128xf32, #tpu.memory_space<vmem>>, vector<16x128xf32>
    %cst = arith.constant dense<0.000000e+00> : vector<8x128xf32>
    %2 = tpu.matmul %0, %1, %cst {dimension_numbers = #tpu.dot_dimension_numbers<[1], [0], [0], [1], [0, 0, 1, 1], [], []>} : vector<8x16xf32>, vector<16x128xf32>, vector<8x128xf32> -> vector<8x128xf32>
    %c0_3 = arith.constant 0 : index
    %c0_4 = arith.constant 0 : index
    %3 = vector.load %arg2[%c0_3, %c0_4] : memref<8x16xf32, #tpu.memory_space<vmem>>, vector<8x16xf32>
    %c0_5 = arith.constant 0 : index
    %c0_6 = arith.constant 0 : index
    %4 = vector.load %arg4[%c0_5, %c0_6] : memref<16x128xf32, #tpu.memory_space<vmem>>, vector<16x128xf32>
    %cst_7 = arith.constant dense<0.000000e+00> : vector<8x128xf32>
    %5 = tpu.matmul %3, %4, %cst_7 {dimension_numbers = #tpu.dot_dimension_numbers<[1], [0], [0], [1], [0, 0, 1, 1], [], []>} : vector<8x16xf32>, vector<16x128xf32>, vector<8x128xf32> -> vector<8x128xf32>
    %6 = arith.addf %2, %5 : vector<8x128xf32>
    %c0_8 = arith.constant 0 : index
    %c0_9 = arith.constant 0 : index
    %7 = vector.load %arg5[%c0_8, %c0_9] : memref<1x128xf32, #tpu.memory_space<vmem>>, vector<1x128xf32>
    %8 = vector.broadcast %7 : vector<1x128xf32> to vector<8x128xf32>
    %9 = arith.addf %6, %8 : vector<8x128xf32>
    %c0_10 = arith.constant 0 : index
    %c0_11 = arith.constant 0 : index
    %10 = vector.load %arg6[%c0_10, %c0_11] : memref<8x128xf32, #tpu.memory_space<vmem>>, vector<8x128xf32>
    tpu.vector_store %arg6[%c0_10, %c0_11], %9 {strides = array<i32>} : memref<8x128xf32, #tpu.memory_space<vmem>>, vector<8x128xf32>,
    return
  }
  func.func @transform_0(%arg0: i32) -> (i32, i32) {
    %c0_i32 = arith.constant 0 : i32
    %c0_i32_0 = arith.constant 0 : i32
    return %arg0, %c0_i32 : i32, i32
  }
  func.func @transform_1(%arg0: i32) -> (i32, i32) {
    %c0_i32 = arith.constant 0 : i32
    %c0_i32_0 = arith.constant 0 : i32
    return %arg0, %c0_i32 : i32, i32
  }
  func.func @transform_2(%arg0: i32) -> (i32, i32) {
    %c0_i32 = arith.constant 0 : i32
    %c0_i32_0 = arith.constant 0 : i32
    %c0_i32_1 = arith.constant 0 : i32
    return %c0_i32, %c0_i32_0 : i32, i32
  }
  func.func @transform_3(%arg0: i32) -> (i32, i32) {
    %c0_i32 = arith.constant 0 : i32
    %c0_i32_0 = arith.constant 0 : i32
    %c0_i32_1 = arith.constant 0 : i32
    return %c0_i32, %c0_i32_0 : i32, i32
  }
  func.func @transform_4(%arg0: i32) -> (i32, i32) {
    %c0_i32 = arith.constant 0 : i32
    %c0_i32_0 = arith.constant 0 : i32
    %c0_i32_1 = arith.constant 0 : i32
    return %c0_i32, %c0_i32_0 : i32, i32
  }
  func.func @transform_5(%arg0: i32) -> (i32, i32) {
    %c0_i32 = arith.constant 0 : i32
    %c0_i32_0 = arith.constant 0 : i32
    return %arg0, %c0_i32 : i32, i32
  }
}

</mosaic_0001>

<bundles_post_ra>
// kernel: tpu_custom_call.1
= control target key start
LH: loop header
LB: loop body
LE: loop exit
PB: predicated region body
PF: predicated region fallthrough
CT: control target
= control target key end

     0   :  { %10 = vsyncpa [#allocation3], 0  ;;  %s511_s0 = inlined_call_operand.hbm [shape: f32[8,16], index: 0, kind: input, shape index: {}]   ;;  %s512_s1 = inlined_call_operand.hbm [shape: f32[8,16], index: 1, kind: input, shape index: {}]   ;;  %s513_s2 = inlined_call_operand.hbm [shape: f32[16,128], index: 2, kind: input, shape index: {}]   ;;  %s514_s3 = inlined_call_operand.hbm [shape: f32[16,128], index: 3, kind: input, shape index: {}]   ;;  %s515_s4 = inlined_call_operand.vmem [shape: f32[1,128], index: 4, kind: input, shape index: {}]   ;;  %s516_s5 = inlined_call_operand.hbm [shape: f32[8,128], index: 5, kind: output, shape index: {}]  }
   0x1   :  { %11 = vsyncpa [#allocation6], 0 }
   0x2   :  { %12 = vsyncpa [#allocation9], 0 }
   0x3   :  { %13 = vsyncpa [#allocation4], 0  ;;  %s408_s18 = smov [#allocation5]   ;;  %s409_s20 = smov [#allocation2]  }
   0x4   :  { %s30_s19 = sshll.u32 %s408_s18, 4  ;;  %s20_s21 = sshll.u32 %s409_s20, 4  ;;  %s31_s19 = int_to_ptr.vmem [resolvable:$true] %s30_s19  ;;  %s21_s21 = int_to_ptr.vmem [resolvable:$true] %s20_s21 }
   0x5   :  { %s290_s24 = scalar_lea.hbm %s512_s1, 128 }
   0x6   :  { %p291_p0 = scmp.ne.s32.totalorder %s512_s1, %s290_s24  ;;  %p294_p1 = scmp.lt.u32.totalorder %s290_s24, %s512_s1 }
   0x8   :  { %p296_p2 = pnand %p294_p1, %p291_p0 }
   0xa   :  { %299 = shalt.err (!%p296_p2)
}
   0xb   :  { %s300_s29 = scalar_lea.vmem %s31_s19, 128  ;;  %p305_p4 = scmp.lt.s32.totalorder %s31_s19, %s31_s19 }
   0xc   :  { %p301_p3 = scmp.ne.s32.totalorder %s31_s19, %s300_s29  ;;  %p306_p5 = scmp.lt.s32.totalorder %s300_s29, %s300_s29 }
   0xe   :  { %p307_p6 = por %p306_p5, %p305_p4 }
  0x10   :  { %p308_p7 = pnand %p307_p6, %p301_p3 }
  0x12   :  { %311 = shalt.err (!%p308_p7)
}
  0x13   :  { %33 = dma.hbm_to_vmem [thread:$0]  %s512_s1, 128, %s31_s19, [#allocation6]  }
  0x14   :  { %s312_s9 = scalar_lea.hbm %s511_s0, 128 }
  0x15   :  { %p313_p8 = scmp.ne.s32.totalorder %s511_s0, %s312_s9  ;;  %p316_p9 = scmp.lt.u32.totalorder %s312_s9, %s511_s0 }
  0x17   :  { %p318_p10 = pnand %p316_p9, %p313_p8 }
  0x19   :  { %321 = shalt.err (!%p318_p10)
}
  0x1a   :  { %s322_s14 = scalar_lea.vmem %s21_s21, 128  ;;  %p327_p12 = scmp.lt.s32.totalorder %s21_s21, %s21_s21 }
  0x1b   :  { %p323_p11 = scmp.ne.s32.totalorder %s21_s21, %s322_s14  ;;  %p328_p13 = scmp.lt.s32.totalorder %s322_s14, %s322_s14 }
  0x1d   :  { %p329_p0 = por %p328_p13, %p327_p12 }
  0x1f   :  { %p330_p1 = pnand %p329_p0, %p323_p11 }
  0x21   :  { %333 = shalt.err (!%p330_p1)
}
  0x22   :  { %23 = dma.hbm_to_vmem [thread:$0]  %s511_s0, 128, %s21_s21, [#allocation3]  }
  0x23   :  { %s410_s16 = smov [#allocation7]   ;;  %s334_s20 = scalar_lea.hbm %s513_s2, 256 }
  0x24   :  { %s39_s17 = sshll.u32 %s410_s16, 4  ;;  %p335_p2 = scmp.ne.s32.totalorder %s513_s2, %s334_s20  ;;  %s40_s17 = int_to_ptr.vmem [resolvable:$true] %s39_s17 }
  0x25   :  { %p338_p3 = scmp.lt.u32.totalorder %s334_s20, %s513_s2 }
  0x27   :  { %p340_p4 = pnand %p338_p3, %p335_p2 }
  0x29   :  { %343 = shalt.err (!%p340_p4)
}
  0x2a   :  { %s344_s26 = scalar_lea.vmem %s40_s17, 256  ;;  %p349_p6 = scmp.lt.s32.totalorder %s40_s17, %s40_s17 }
  0x2b   :  { %p345_p5 = scmp.ne.s32.totalorder %s40_s17, %s344_s26  ;;  %p350_p7 = scmp.lt.s32.totalorder %s344_s26, %s344_s26 }
  0x2d   :  { %p351_p8 = por %p350_p7, %p349_p6 }
  0x2f   :  { %p352_p9 = pnand %p351_p8, %p345_p5 }
  0x31   :  { %355 = shalt.err (!%p352_p9)
}
  0x32   :  { %s411_s0 = smov 128   ;;  %s412_s21 = smov 8  }
  0x33   :  { %45 = dma.hbm_to_vmem [thread:$0]  %s513_s2, 256, %s40_s17, [#allocation6], %s411_s0, %s411_s0, %s412_s21  }
  0x34   :  { %s413_s29 = smov [#allocation8]   ;;  %s356_s8 = scalar_lea.hbm %s514_s3, 256 }
  0x35   :  { %s51_s30 = sshll.u32 %s413_s29, 4  ;;  %p357_p10 = scmp.ne.s32.totalorder %s514_s3, %s356_s8  ;;  %s52_s30 = int_to_ptr.vmem [resolvable:$true] %s51_s30 }
  0x36   :  { %p360_p11 = scmp.lt.u32.totalorder %s356_s8, %s514_s3 }
  0x38   :  { %p362_p12 = pnand %p360_p11, %p357_p10 }
  0x3a   :  { %365 = shalt.err (!%p362_p12)
}
  0x3b   :  { %s366_s13 = scalar_lea.vmem %s52_s30, 256  ;;  %p371_p0 = scmp.lt.s32.totalorder %s52_s30, %s52_s30 }
  0x3c   :  { %p367_p13 = scmp.ne.s32.totalorder %s52_s30, %s366_s13  ;;  %p372_p1 = scmp.lt.s32.totalorder %s366_s13, %s366_s13 }
  0x3e   :  { %p373_p2 = por %p372_p1, %p371_p0 }
  0x40   :  { %p374_p3 = pnand %p373_p2, %p367_p13 }
  0x42   :  { %377 = shalt.err (!%p374_p3)
}
  0x43   :  { %57 = dma.hbm_to_vmem [thread:$0]  %s514_s3, 256, %s52_s30, [#allocation9], %s411_s0, %s411_s0, %s412_s21  }
  0x44   :  { %400 = dma.done.wait [#allocation3], 128  }
  0x45   :  { %401 = vsyncadd [#allocation3], 4294967168 }
  0x46   :  { %402 = dma.done.wait [#allocation6], 384  }
  0x47   :  { %403 = vsyncadd [#allocation6], 4294966912 }
  0x48   :  { %404 = dma.done.wait [#allocation9], 256  }
  0x49   :  { %405 = vsyncadd [#allocation9], 4294967040  ;;  %v414_v0 = vmov 0.0|0.0   ;;  %vm415_vm0 = vmmov 0   ;;  %v416_v1 = vmov 0.0   ;;  %v76_v2 = vld [vmem:[#allocation8] sm:$0xff] }
  0x4a   :  { %274 = vmatprep.subr.bf16.mxu0 %v414_v0  ;;  %277 = vmatprep.subr.bf16.mxu1 %v414_v0  ;;  %v77_v3 = vld [vmem:[#allocation8 + $0x8] sm:$0xff]  ;;  %v73_v4 = vld [vmem:[#allocation7] sm:$0xff]  ;;  %v74_v6 = vld [vmem:[#allocation7 + $0x8] sm:$0xff]  ;;  %vm78_vm1 = vcmask 130048   ;;  %s417_s15 = smov [#allocation10]  }
  0x4b   :  { %264 = vmatprep.mubr.msk.f32.mxu0 %vm415_vm0, %v416_v1  ;;  %271 = vmatprep.mubr.msk.f32.mxu1 %vm415_vm0, %v416_v1  ;;  %v275_v5 = vpack.c.bf16 %v77_v3, %v76_v2  ;;  %v278_v7 = vpack.c.bf16 %v74_v6, %v73_v4  ;;  %v75_v8 = vld [vmem:[#allocation5] sm:$0xff]  ;;  %v72_v9 = vld [vmem:[#allocation2] sm:$0xff]  ;;  %s240_s16 = sshll.u32 %s417_s15, 4  ;;  %s241_s16 = int_to_ptr.vmem [resolvable:$true] %s240_s16 }
  0x4c   :  { %v253_v12 = vld [vmem:[%s515_s4] ss:$0 sm:$0xff]  ;;  %s378_s17 = scalar_lea.vmem %s241_s16, 128  ;;  %p383_p5 = scmp.lt.s32.totalorder %s241_s16, %s241_s16 }
  0x4d   :  { %276 = vmatpush3.bf16.msra.mxu0 %v275_v5  ;;  %279 = vmatpush3.bf16.msra.mxu1 %v278_v7  ;;  %p379_p4 = scmp.ne.s32.totalorder %s241_s16, %s378_s17  ;;  %p384_p6 = scmp.lt.s32.totalorder %s378_s17, %s378_s17 }
  0x4f   :  { %p385_p7 = por %p384_p6, %p383_p5 }
  0x50   :  { %265 = vmatmul.mubr.msk.f32.vlgmr.msra.gmra.mrb[0].mxu0 %vm78_vm1, %v75_v8  ;;  %272 = vmatmul.mubr.msk.f32.vlgmr.msra.gmra.mrb[0].mxu1 %vm78_vm1, %v72_v9 }
  0x51   :  { %p386_p8 = pnand %p385_p7, %p379_p4 }
 0x123   :  { %v148_v10 = vpop.f32.mrb[0].mxu0  ;;  %v221_v11 = vpop.f32.mrb[0].mxu1 }
 0x124   :  { %v266_v13 = vpop.f32.mrb[1].mxu0  ;;  %v222_v14 = vadd.f32 %v221_v11, %v148_v10  ;;  %v273_v15 = vpop.f32.mrb[1].mxu1 }
 0x126   :  { %v232_v16 = vadd.f32 %v253_v12, %v222_v14 }
 0x128   :  { %233 = vst [vmem:[#allocation10] sm:$0xff] %v232_v16 }
 0x129   :  { %389 = shalt.err (!%p386_p8)
}
 0x12a   :  { %s390_s20 = scalar_lea.hbm %s516_s5, 128 }
 0x12b   :  { %p391_p9 = scmp.ne.s32.totalorder %s516_s5, %s390_s20  ;;  %p394_p10 = scmp.lt.u32.totalorder %s390_s20, %s516_s5 }
 0x12d   :  { %p396_p11 = pnand %p394_p10, %p391_p9 }
 0x12f   :  { %399 = shalt.err (!%p396_p11)
}
 0x130   :  { %243 = dma.vmem_to_hbm [thread:$0]  %s241_s16, 128, %s516_s5, [#allocation4]  }
 0x131   :  { %406 = dma.done.wait [#allocation4], 128  }
 0x132   :  { %407 = vsyncadd [#allocation4], 4294967168 }
 0x133   :  { %247 = vsyncpa [#allocation3], 1 }
 0x134   :  { %248 = vsyncpa [#allocation6], 1 }
 0x135   :  { %249 = vsyncpa [#allocation9], 1 }
 0x136   :  { %250 = vsyncpa [#allocation4], 1 }

</bundles_post_ra>
